<compile_context>
chip_gen: v6e
topology: v6e:2x2x1
jax: 0.10.0
libtpu: 0.0.40
codegen_flags: <defaults>
</compile_context>

<pallas_src>
import functools

import jax
import jax.numpy as jnp
from jax.experimental import pallas as pl
from jax.experimental.pallas import tpu as pltpu


def _round_up(x, m):
    return (x + m - 1) // m * m


def _ode_func_kernel(y_ref, w1_ref, b1_ref, w2_ref, b2_ref, o_ref):
    # hidden = tanh(y @ W1 + b1)   -- W1 already (in, out): no in-kernel transpose.
    h = jnp.dot(y_ref[...], w1_ref[...], preferred_element_type=jnp.float32)
    h = jnp.tanh(h + b1_ref[...])            # b1 is (1, Hp) -> broadcasts over batch
    # grad = hidden @ W2 + b2      -- `backwards` sign already folded into W2/b2.
    g = jnp.dot(h, w2_ref[...], preferred_element_type=jnp.float32)
    o_ref[...] = (g + b2_ref[...]).astype(o_ref.dtype)


def _prepare_params(params):
    """Host-side, one-time prep: transpose PyTorch-style (out, in) weights to
    (in, out) and zero-pad feature dims up to multiples of 128 (lane-dense)."""
    w1, b1, w2, b2 = params
    H, D = w1.shape
    Dp, Hp = _round_up(D, 128), _round_up(H, 128)
    w1t = jnp.zeros((Dp, Hp), w1.dtype).at[:D, :H].set(w1.T)
    b1p = jnp.zeros((1, Hp), b1.dtype).at[:, :H].set(jnp.reshape(b1, (1, H)))
    w2t = jnp.zeros((Hp, Dp), w2.dtype).at[:H, :D].set(w2.T)
    b2p = jnp.zeros((1, Dp), b2.dtype).at[:, :D].set(jnp.reshape(b2, (1, D)))
    return (w1t, b1p, w2t, b2p), (D, H, Dp, Hp)


@functools.partial(jax.jit, static_argnames=("backwards",))
def ode_func_forward(t_local, y, params, backwards=False):
    """Pallas equivalent of ODEFunc.forward.

    t_local is unused by the gradient net (matches the PyTorch module, which
    ignores the time point inside get_ode_gradient_nn).
    Under jit, the host-side padding / transpose / sign-fold below is
    constant-folded, so repeated solver evaluations only pay the fused kernel.
    """
    del t_local
    (w1t, b1p, w2t, b2p), (D, H, Dp, Hp) = _prepare_params(params)
    if backwards:  # fold negation into the second layer (exact)
        w2t, b2p = -w2t, -b2p

    B, D_in = y.shape
    assert D_in == D, f"y feature dim {D_in} != weight input dim {D}"

    # Batch tiling: single grid axis, marked "parallel" (v7x 2-TC sharding when
    # B is large).  Weights stay VMEM-resident across all grid steps.
    TB = min(_round_up(B, 8), 512)       # >=512-row tiles keep grid overhead <1%
    Bp = _round_up(B, TB)
    yp = jnp.zeros((Bp, Dp), y.dtype).at[:B, :D].set(y)

    out_p = pl.pallas_call(
        _ode_func_kernel,
        out_shape=jax.ShapeDtypeStruct((Bp, Dp), y.dtype),
        grid=(Bp // TB,),
        in_specs=[
            pl.BlockSpec((TB, Dp), lambda i: (i, 0)),   # y tile (lane-dense)
            pl.BlockSpec((Dp, Hp), lambda i: (0, 0)),   # W1 (in, out), resident
            pl.BlockSpec((1, Hp), lambda i: (0, 0)),    # b1, resident
            pl.BlockSpec((Hp, Dp), lambda i: (0, 0)),   # W2 (in, out), resident
            pl.BlockSpec((1, Dp), lambda i: (0, 0)),    # b2, resident
        ],
        out_specs=pl.BlockSpec((TB, Dp), lambda i: (i, 0)),
        compiler_params=pltpu.CompilerParams(
            dimension_semantics=("parallel",)),
    )(yp, w1t, b1p, w2t, b2p)

    return out_p[:B, :D]


def init_ode_func_params(key, latent_dim, hidden_dim, std=0.1):
    """Mirrors init_network_weights: Linear weights ~ N(0, std), bias = 0.
    Stored PyTorch-style: (out_features, in_features)."""
    k1, k2 = jax.random.split(key)
    w1 = std * jax.random.normal(k1, (hidden_dim, latent_dim), jnp.float32)
    b1 = jnp.zeros((1, hidden_dim), jnp.float32)
    w2 = std * jax.random.normal(k2, (latent_dim, hidden_dim), jnp.float32)
    b2 = jnp.zeros((1, latent_dim), jnp.float32)
    return (w1, b1, w2, b2)


def _reference_forward(t_local, y, params, backwards=False):
    """Plain-JAX reference for correctness checking."""
    del t_local
    w1, b1, w2, b2 = params
    h = jnp.tanh(y @ w1.T + b1)
    g = h @ w2.T + b2
    return -g if backwards else g


# TODO(synk): the ODE-solver time-stepping loop lives in the caller; fusing all
# RK stage evaluations into one pallas_call (time as an extra grid axis with
# weights resident) is the next structural win but is outside this module.


if __name__ == "__main__":
    key = jax.random.PRNGKey(0)
    k_param, k_y = jax.random.split(key)

    batch, latent_dim, hidden_dim = 8, 32, 64
    params = init_ode_func_params(k_param, latent_dim, hidden_dim, std=0.1)
    y = jax.random.normal(k_y, (batch, latent_dim), jnp.float32)
    t_local = jnp.float32(0.5)   # unused by the gradient net, as in PyTorch

    grad = ode_func_forward(t_local, y, params, backwards=False)
    grad = jax.block_until_ready(grad)

    grad_bwd = ode_func_forward(t_local, y, params, backwards=True)
    grad_bwd = jax.block_until_ready(grad_bwd)

    ref = _reference_forward(t_local, y, params, backwards=False)
    ref_bwd = _reference_forward(t_local, y, params, backwards=True)

    assert grad.shape == (batch, latent_dim)
    assert jnp.allclose(grad, ref, atol=1e-5, rtol=1e-5)
    assert jnp.allclose(grad_bwd, ref_bwd, atol=1e-5, rtol=1e-5)
    assert jnp.allclose(grad_bwd, -grad, atol=1e-6)

    print("KERNEL_OK")
</pallas_src>

<mosaic_0001>
module attributes {stable_mosaic.version = 11 : i64} {
  func.func @_ode_func_kernel(%arg0: i32, %arg1: memref<8x128xf32, #tpu.memory_space<vmem>>, %arg2: memref<128x128xf32, #tpu.memory_space<vmem>>, %arg3: memref<1x128xf32, #tpu.memory_space<vmem>>, %arg4: memref<128x128xf32, #tpu.memory_space<vmem>>, %arg5: memref<1x128xf32, #tpu.memory_space<vmem>>, %arg6: memref<8x128xf32, #tpu.memory_space<vmem>>) attributes {dimension_semantics = [#tpu.dimension_semantics<parallel>], iteration_bounds = array<i64: 1>, scalar_prefetch = 0 : i64, scratch_operands = 0 : i64, tpu.core_type = #tpu.core_type<tc>, window_params = [{transform_indices = @transform_0, window_bounds = array<i64: 8, 128>}, {pipeline_mode = #tpu.pipeline_mode<synchronous>, transform_indices = @transform_1, window_bounds = array<i64: 128, 128>}, {pipeline_mode = #tpu.pipeline_mode<synchronous>, transform_indices = @transform_2, window_bounds = array<i64: 1, 128>}, {pipeline_mode = #tpu.pipeline_mode<synchronous>, transform_indices = @transform_3, window_bounds = array<i64: 128, 128>}, {pipeline_mode = #tpu.pipeline_mode<synchronous>, transform_indices = @transform_4, window_bounds = array<i64: 1, 128>}, {transform_indices = @transform_5, window_bounds = array<i64: 8, 128>}]} {
    %c0 = arith.constant 0 : index
    %c0_0 = arith.constant 0 : index
    %0 = vector.load %arg1[%c0, %c0_0] : memref<8x128xf32, #tpu.memory_space<vmem>>, vector<8x128xf32>
    %c0_1 = arith.constant 0 : index
    %c0_2 = arith.constant 0 : index
    %1 = vector.load %arg2[%c0_1, %c0_2] : memref<128x128xf32, #tpu.memory_space<vmem>>, vector<128x128xf32>
    %cst = arith.constant dense<0.000000e+00> : vector<8x128xf32>
    %2 = tpu.matmul %0, %1, %cst {dimension_numbers = #tpu.dot_dimension_numbers<[1], [0], [0], [1], [0, 0, 1, 1], [], []>} : vector<8x128xf32>, vector<128x128xf32>, vector<8x128xf32> -> vector<8x128xf32>
    %c0_3 = arith.constant 0 : index
    %c0_4 = arith.constant 0 : index
    %3 = vector.load %arg3[%c0_3, %c0_4] : memref<1x128xf32, #tpu.memory_space<vmem>>, vector<1x128xf32>
    %4 = vector.broadcast %3 : vector<1x128xf32> to vector<8x128xf32>
    %5 = arith.addf %2, %4 : vector<8x128xf32>
    %6 = math.tanh %5 : vector<8x128xf32>
    %c0_5 = arith.constant 0 : index
    %c0_6 = arith.constant 0 : index
    %7 = vector.load %arg4[%c0_5, %c0_6] : memref<128x128xf32, #tpu.memory_space<vmem>>, vector<128x128xf32>
    %cst_7 = arith.constant dense<0.000000e+00> : vector<8x128xf32>
    %8 = tpu.matmul %6, %7, %cst_7 {dimension_numbers = #tpu.dot_dimension_numbers<[1], [0], [0], [1], [0, 0, 1, 1], [], []>} : vector<8x128xf32>, vector<128x128xf32>, vector<8x128xf32> -> vector<8x128xf32>
    %c0_8 = arith.constant 0 : index
    %c0_9 = arith.constant 0 : index
    %9 = vector.load %arg5[%c0_8, %c0_9] : memref<1x128xf32, #tpu.memory_space<vmem>>, vector<1x128xf32>
    %10 = vector.broadcast %9 : vector<1x128xf32> to vector<8x128xf32>
    %11 = arith.addf %8, %10 : vector<8x128xf32>
    %c0_10 = arith.constant 0 : index
    %c0_11 = arith.constant 0 : index
    %12 = vector.load %arg6[%c0_10, %c0_11] : memref<8x128xf32, #tpu.memory_space<vmem>>, vector<8x128xf32>
    tpu.vector_store %arg6[%c0_10, %c0_11], %11 {strides = array<i32>} : memref<8x128xf32, #tpu.memory_space<vmem>>, vector<8x128xf32>,
    return
  }
  func.func @transform_0(%arg0: i32) -> (i32, i32) {
    %c0_i32 = arith.constant 0 : i32
    %c0_i32_0 = arith.constant 0 : i32
    return %arg0, %c0_i32 : i32, i32
  }
  func.func @transform_1(%arg0: i32) -> (i32, i32) {
    %c0_i32 = arith.constant 0 : i32
    %c0_i32_0 = arith.constant 0 : i32
    %c0_i32_1 = arith.constant 0 : i32
    return %c0_i32, %c0_i32_0 : i32, i32
  }
  func.func @transform_2(%arg0: i32) -> (i32, i32) {
    %c0_i32 = arith.constant 0 : i32
    %c0_i32_0 = arith.constant 0 : i32
    %c0_i32_1 = arith.constant 0 : i32
    return %c0_i32, %c0_i32_0 : i32, i32
  }
  func.func @transform_3(%arg0: i32) -> (i32, i32) {
    %c0_i32 = arith.constant 0 : i32
    %c0_i32_0 = arith.constant 0 : i32
    %c0_i32_1 = arith.constant 0 : i32
    return %c0_i32, %c0_i32_0 : i32, i32
  }
  func.func @transform_4(%arg0: i32) -> (i32, i32) {
    %c0_i32 = arith.constant 0 : i32
    %c0_i32_0 = arith.constant 0 : i32
    %c0_i32_1 = arith.constant 0 : i32
    return %c0_i32, %c0_i32_0 : i32, i32
  }
  func.func @transform_5(%arg0: i32) -> (i32, i32) {
    %c0_i32 = arith.constant 0 : i32
    %c0_i32_0 = arith.constant 0 : i32
    return %arg0, %c0_i32 : i32, i32
  }
}

</mosaic_0001>

<bundles_post_ra>
// kernel: ode_func_forward.1
= control target key start
LH: loop header
LB: loop body
LE: loop exit
PB: predicated region body
PF: predicated region fallthrough
CT: control target
= control target key end

     0   :  { %v357_v1 = vmov 0.0   ;;  %vm358_vm0 = vmmov 0   ;;  %s532_s0 = inlined_call_operand.vmem [shape: f32[8,128], index: 0, kind: input, shape index: {}]   ;;  %s533_s1 = inlined_call_operand.vmem [shape: f32[128,128], index: 1, kind: input, shape index: {}]   ;;  %s534_s2 = inlined_call_operand.vmem [shape: f32[1,128], index: 2, kind: input, shape index: {}]   ;;  %s535_s3 = inlined_call_operand.vmem [shape: f32[128,128], index: 3, kind: input, shape index: {}]   ;;  %s536_s4 = inlined_call_operand.vmem [shape: f32[1,128], index: 4, kind: input, shape index: {}]   ;;  %s537_s5 = inlined_call_operand.hbm [shape: f32[8,128], index: 5, kind: output, shape index: {}]  }
   0x1   :  { %v37_v0 = vld [vmem:[%s533_s1 + $0x78] sm:$0xff]  ;;  %260 = vmatprep.subr.mxu0 %v357_v1  ;;  %v36_v2 = vld [vmem:[%s533_s1 + $0x70] sm:$0xff]  ;;  %292 = vmatprep.mubr.msk.f32.mxu0 %vm358_vm0, %v357_v1  ;;  %v35_v3 = vld [vmem:[%s533_s1 + $0x68] sm:$0xff] }
   0x2   :  { %261 = vmatpush3.msra.mxu0 %v37_v0  ;;  %295 = vmatprep.subr.mxu1 %v357_v1  ;;  %v34_v4 = vld [vmem:[%s533_s1 + $0x60] sm:$0xff]  ;;  %v131_v5 = vld [vmem:[%s535_s3 + $0x78] sm:$0xff]  ;;  %v130_v6 = vld [vmem:[%s535_s3 + $0x70] sm:$0xff] }
   0x3   :  { %262 = vmatprep.subr.mxu0 %v357_v1  ;;  %327 = vmatprep.mubr.msk.f32.mxu1 %vm358_vm0, %v357_v1  ;;  %v33_v7 = vld [vmem:[%s533_s1 + $0x58] sm:$0xff]  ;;  %v129_v8 = vld [vmem:[%s535_s3 + $0x68] sm:$0xff] }
   0x4   :  { %263 = vmatpush3.msra.mxu0 %v36_v2  ;;  %296 = vmatpush3.msra.mxu1 %v131_v5 }
   0x5   :  { %264 = vmatprep.subr.mxu0 %v357_v1  ;;  %297 = vmatprep.subr.mxu1 %v357_v1 }
   0x6   :  { %265 = vmatpush3.msra.mxu0 %v35_v3  ;;  %298 = vmatpush3.msra.mxu1 %v130_v6 }
   0x7   :  { %266 = vmatprep.subr.mxu0 %v357_v1 }
   0x8   :  { %267 = vmatpush3.msra.mxu0 %v34_v4 }
   0x9   :  { %10 = vsyncpa [#allocation3], 0  ;;  %268 = vmatprep.subr.mxu0 %v357_v1  ;;  %v32_v9 = vld [vmem:[%s533_s1 + $0x50] sm:$0xff]  ;;  %299 = vmatprep.subr.mxu1 %v357_v1  ;;  %v128_v10 = vld [vmem:[%s535_s3 + $0x60] sm:$0xff]  ;;  %s359_s11 = smov [#allocation2]  }
   0xa   :  { %269 = vmatpush3.msra.mxu0 %v33_v7  ;;  %300 = vmatpush3.msra.mxu1 %v129_v8  ;;  %v31_v11 = vld [vmem:[%s533_s1 + $0x48] sm:$0xff]  ;;  %v127_v12 = vld [vmem:[%s535_s3 + $0x58] sm:$0xff]  ;;  %v30_v13 = vld [vmem:[%s533_s1 + $0x40] sm:$0xff] }
   0xb   :  { %270 = vmatprep.subr.mxu0 %v357_v1  ;;  %301 = vmatprep.subr.mxu1 %v357_v1  ;;  %v126_v14 = vld [vmem:[%s535_s3 + $0x50] sm:$0xff]  ;;  %v29_v15 = vld [vmem:[%s533_s1 + $0x38] sm:$0xff]  ;;  %v125_v16 = vld [vmem:[%s535_s3 + $0x48] sm:$0xff] }
   0xc   :  { %271 = vmatpush3.msra.mxu0 %v32_v9  ;;  %302 = vmatpush3.msra.mxu1 %v128_v10  ;;  %v28_v17 = vld [vmem:[%s533_s1 + $0x30] sm:$0xff]  ;;  %v27_v18 = vld [vmem:[%s533_s1 + $0x28] sm:$0xff]  ;;  %v26_v19 = vld [vmem:[%s533_s1 + $0x20] sm:$0xff] }
   0xd   :  { %272 = vmatprep.subr.mxu0 %v357_v1  ;;  %303 = vmatprep.subr.mxu1 %v357_v1  ;;  %v25_v20 = vld [vmem:[%s533_s1 + $0x18] sm:$0xff]  ;;  %v24_v21 = vld [vmem:[%s533_s1 + $0x10] sm:$0xff]  ;;  %v23_v22 = vld [vmem:[%s533_s1 + $0x8] sm:$0xff] }
   0xe   :  { %273 = vmatpush3.msra.mxu0 %v31_v11  ;;  %304 = vmatpush3.msra.mxu1 %v127_v12  ;;  %v22_v23 = vld [vmem:[%s533_s1] sm:$0xff]  ;;  %v123_v26 = vld [vmem:[%s535_s3 + $0x38] sm:$0xff]  ;;  %v122_v27 = vld [vmem:[%s535_s3 + $0x30] sm:$0xff] }
   0xf   :  { %274 = vmatprep.subr.mxu0 %v357_v1  ;;  %305 = vmatprep.subr.mxu1 %v357_v1  ;;  %v21_v24 = vld [vmem:[%s532_s0] sm:$0xff]  ;;  %v121_v28 = vld [vmem:[%s535_s3 + $0x28] sm:$0xff]  ;;  %v119_v30 = vld [vmem:[%s535_s3 + $0x18] sm:$0xff] }
  0x10   :  { %275 = vmatpush3.msra.mxu0 %v30_v13  ;;  %306 = vmatpush3.msra.mxu1 %v126_v14  ;;  %v124_v25 = vld [vmem:[%s535_s3 + $0x40] sm:$0xff]  ;;  %v118_v31 = vld [vmem:[%s535_s3 + $0x10] sm:$0xff]  ;;  %v117_v32 = vld [vmem:[%s535_s3 + $0x8] sm:$0xff] }
  0x11   :  { %276 = vmatprep.subr.mxu0 %v357_v1  ;;  %307 = vmatprep.subr.mxu1 %v357_v1  ;;  %v120_v29 = vld [vmem:[%s535_s3 + $0x20] sm:$0xff] }
  0x12   :  { %277 = vmatpush3.msra.mxu0 %v29_v15  ;;  %308 = vmatpush3.msra.mxu1 %v125_v16  ;;  %v116_v33 = vld [vmem:[%s535_s3] sm:$0xff]  ;;  %s216_s3 = sshll.u32 %s359_s11, 4  ;;  %s217_s3 = int_to_ptr.vmem [resolvable:$true] %s216_s3 }
  0x13   :  { %278 = vmatprep.subr.mxu0 %v357_v1  ;;  %309 = vmatprep.subr.mxu1 %v357_v1  ;;  %v224_v34 = vld [vmem:[%s534_s2] ss:$0 sm:$0xff]  ;;  %s335_s12 = scalar_lea.vmem %s217_s3, 128  ;;  %p340_p1 = scmp.lt.s32.totalorder %s217_s3, %s217_s3 }
  0x14   :  { %279 = vmatpush3.msra.mxu0 %v28_v17  ;;  %310 = vmatpush3.msra.mxu1 %v124_v25  ;;  %v225_v39 = vld [vmem:[%s536_s4] ss:$0 sm:$0xff]  ;;  %p336_p0 = scmp.ne.s32.totalorder %s217_s3, %s335_s12  ;;  %p341_p2 = scmp.lt.s32.totalorder %s335_s12, %s335_s12 }
  0x15   :  { %280 = vmatprep.subr.mxu0 %v357_v1  ;;  %311 = vmatprep.subr.mxu1 %v357_v1 }
  0x16   :  { %281 = vmatpush3.msra.mxu0 %v27_v18  ;;  %312 = vmatpush3.msra.mxu1 %v123_v26  ;;  %p342_p3 = por %p341_p2, %p340_p1 }
  0x17   :  { %282 = vmatprep.subr.mxu0 %v357_v1  ;;  %313 = vmatprep.subr.mxu1 %v357_v1 }
  0x18   :  { %283 = vmatpush3.msra.mxu0 %v26_v19  ;;  %314 = vmatpush3.msra.mxu1 %v122_v27  ;;  %p343_p4 = pnand %p342_p3, %p336_p0 }
  0x19   :  { %284 = vmatprep.subr.mxu0 %v357_v1  ;;  %315 = vmatprep.subr.mxu1 %v357_v1 }
  0x1a   :  { %285 = vmatpush3.msra.mxu0 %v25_v20  ;;  %316 = vmatpush3.msra.mxu1 %v121_v28 }
  0x1b   :  { %286 = vmatprep.subr.mxu0 %v357_v1  ;;  %317 = vmatprep.subr.mxu1 %v357_v1 }
  0x1c   :  { %287 = vmatpush3.msra.mxu0 %v24_v21  ;;  %318 = vmatpush3.msra.mxu1 %v120_v29 }
  0x1d   :  { %288 = vmatprep.subr.mxu0 %v357_v1  ;;  %319 = vmatprep.subr.mxu1 %v357_v1 }
  0x1e   :  { %289 = vmatpush3.msra.mxu0 %v23_v22  ;;  %320 = vmatpush3.msra.mxu1 %v119_v30 }
  0x1f   :  { %290 = vmatprep.subr.mxu0 %v357_v1  ;;  %321 = vmatprep.subr.mxu1 %v357_v1 }
  0x20   :  { %291 = vmatpush3.msra.mxu0 %v22_v23  ;;  %322 = vmatpush3.msra.mxu1 %v118_v31 }
  0x21   :  { %293 = vmatmul.mubr.f32.vlgmr.msra.gmra.mxu0 %v21_v24  ;;  %323 = vmatprep.subr.mxu1 %v357_v1 }
  0x22   :  { %324 = vmatpush3.msra.mxu1 %v117_v32 }
  0x23   :  { %325 = vmatprep.subr.mxu1 %v357_v1 }
  0x24   :  { %326 = vmatpush3.msra.mxu1 %v116_v33 }
  0xe1   :  { %v111_v35 = vpop.f32.mrf.mxu0 }
  0xe2   :  { %v112_v36 = vadd.f32 %v224_v34, %v111_v35 }
  0xe3   :  { %v294_v37 = vpop.f32.mrf.mxu0 }
  0xe4   :  { %333 = vtanh.f32 %v112_v36 }
  0xf1   :  { %v334_v38 = vpop.eup %333 }
  0xf2   :  { %328 = vmatmul.mubr.f32.vlgmr.msra.gmra.mxu1 %v334_v38 }
 0x1b2   :  { %v205_v40 = vpop.f32.mrf.mxu1 }
 0x1b3   :  { %v206_v41 = vadd.f32 %v225_v39, %v205_v40 }
 0x1b4   :  { %v329_v42 = vpop.f32.mrf.mxu1 }
 0x1b5   :  { %209 = vst [vmem:[#allocation2] sm:$0xff] %v206_v41 }
 0x1b6   :  { %346 = shalt.err (!%p343_p4)
}
 0x1b7   :  { %219 = dma.vmem_to_hbm [thread:$0]  %s217_s3, 128, %s537_s5, [#allocation3]  }
 0x1b8   :  { %355 = dma.done.wait [#allocation3], 128  }
 0x1b9   :  { %356 = vsyncadd [#allocation3], 4294967168 }
 0x1ba   :  { %223 = vsyncpa [#allocation3], 1 }

</bundles_post_ra>
